<compile_context>
chip_gen: v7x
topology: tpu7x:2x2x1
jax: 0.10.0
libtpu: 0.0.40
codegen_flags: <defaults>
</compile_context>

<pallas_src>
import functools

import jax
import jax.numpy as jnp
from jax import lax
from jax.experimental import pallas as pl
from jax.experimental.pallas import tpu as pltpu


def _masked_gn_kernel(lens_ref, x_ref, w_ref, b_ref, o_ref, s_ref, ss_ref,
                      *, eps, t_valid_max):
    # lens_ref: SMEM (B,) int32 (scalar prefetch)
    # x_ref:    VMEM (1, C_TILE, T_pad)
    # w_ref:    VMEM (C_TILE, 1) fp32
    # b_ref:    VMEM (C_TILE, 1) fp32
    # o_ref:    VMEM (1, C_TILE, T_pad)
    # s_ref/ss_ref: VMEM (C_TILE, 1) fp32 scratch (per-channel sum / sum-of-sq)
    b = pl.program_id(1)                                   # batch = inner axis

    # Clamp to the original T so counts match PyTorch's x[i, :, :x_lens[i]]
    # slicing when x_lens[i] > T.  x_lens[i] == 0 gives Inf/NaN like PyTorch.
    valid = jnp.minimum(lens_ref[b], t_valid_max)          # int32 scalar
    inv_cnt = 1.0 / valid.astype(jnp.float32)

    # --- stats sweep: one pass, sum and sum-of-squares -------------------
    @pl.when(valid >= t_valid_max)
    def _full():
        # Whole block valid; host pad columns (if any) are zeros and add 0.
        x = x_ref[0].astype(jnp.float32)                   # (C_TILE, T_pad)
        s_ref[...] = jnp.sum(x, axis=1, keepdims=True)
        ss_ref[...] = jnp.sum(x * x, axis=1, keepdims=True)

    @pl.when(valid < t_valid_max)
    def _masked():
        x = x_ref[0].astype(jnp.float32)
        t_idx = lax.broadcasted_iota(jnp.int32, x.shape, 1)
        xm = jnp.where(t_idx < valid, x, 0.0)
        s_ref[...] = jnp.sum(xm, axis=1, keepdims=True)
        ss_ref[...] = jnp.sum(xm * xm, axis=1, keepdims=True)

    mean = s_ref[...] * inv_cnt                            # (C_TILE, 1)
    var = jnp.maximum(ss_ref[...] * inv_cnt - mean * mean, 0.0)
    inv_std = lax.rsqrt(var + eps)

    # --- output sweep: fused affine  out = x * a + c ---------------------
    a = inv_std * w_ref[...]                               # (C_TILE, 1)
    c = b_ref[...] - mean * a                              # (C_TILE, 1)
    o_ref[0] = (x_ref[0].astype(jnp.float32) * a + c).astype(o_ref.dtype)


def _chip_budgets():
    """(target block bytes, vmem_limit_bytes), per TPU generation."""
    try:
        vmem_cap = int(getattr(pltpu.get_tpu_info(), "vmem_capacity_bytes",
                               64 << 20))
    except Exception:
        vmem_cap = 64 << 20                      # conservative fallback
    if vmem_cap >= (100 << 20):                  # v5e / v6e: 128 MiB VMEM
        return 6 << 20, 64 << 20
    return 2 << 20, 32 << 20                     # v7x: 64 MiB physical


def _pick_c_tile(C, T, itemsize, target_bytes):
    """Largest channel tile that (a) divides C, (b) is a multiple of the
    packed-sublane count for this dtype, (c) keeps a fp32 (C_TILE, T)
    working block around `target_bytes`."""
    sub = max(8, 32 // max(1, itemsize))         # 8 fp32 / 16 bf16 / 32 int8
    if C % sub != 0:
        return C                                 # fall back to full C (allowed)
    max_tile = max(sub, (target_bytes // (4 * T)) // sub * sub)
    c_tile = min(C, max_tile)
    while c_tile >= sub:
        if C % c_tile == 0:
            return c_tile
        c_tile -= sub
    return C


def fp32_masked_group_norm(x, x_lens, weight, bias, eps=1e-5):
    """x: (B, C, T) any float dtype; x_lens: (B,) ints; weight/bias: (C,)."""
    B, C, T = x.shape

    # Lane-dense writeback: pad T to a multiple of 128 (zeros are excluded
    # from the statistics by the mask / zero-sum property; sliced off below).
    T_pad = ((T + 127) // 128) * 128
    xp = x if T_pad == T else jnp.pad(x, ((0, 0), (0, 0), (0, T_pad - T)))

    w = weight.astype(jnp.float32).reshape(C, 1)
    b = bias.astype(jnp.float32).reshape(C, 1)
    lens = x_lens.astype(jnp.int32)

    target_bytes, vmem_limit = _chip_budgets()
    c_tile = _pick_c_tile(C, T_pad, x.dtype.itemsize, target_bytes)
    n_c_tiles = C // c_tile

    kernel = functools.partial(_masked_gn_kernel, eps=float(eps),
                               t_valid_max=T)

    out = pl.pallas_call(
        kernel,
        out_shape=jax.ShapeDtypeStruct((B, C, T_pad), x.dtype),
        grid_spec=pltpu.PrefetchScalarGridSpec(
            num_scalar_prefetch=1,
            grid=(n_c_tiles, B),   # B innermost: w/b block index is constant
            in_specs=[
                pl.BlockSpec((1, c_tile, T_pad), lambda c, i, lens: (i, c, 0)),
                pl.BlockSpec((c_tile, 1), lambda c, i, lens: (c, 0)),
                pl.BlockSpec((c_tile, 1), lambda c, i, lens: (c, 0)),
            ],
            out_specs=pl.BlockSpec((1, c_tile, T_pad),
                                   lambda c, i, lens: (i, c, 0)),
            scratch_shapes=[pltpu.VMEM((c_tile, 1), jnp.float32),
                            pltpu.VMEM((c_tile, 1), jnp.float32)],
        ),
        compiler_params=pltpu.CompilerParams(
            dimension_semantics=("parallel", "parallel"),
            vmem_limit_bytes=vmem_limit,
        ),
    )(lens, xp, w, b)

    return out if T_pad == T else out[:, :, :T]


def _reference(x, x_lens, weight, bias, eps=1e-5):
    """Pure-JAX reference mirroring the PyTorch module."""
    xf = x.astype(jnp.float32)
    B, C, T = xf.shape
    lens = jnp.minimum(x_lens, T)                       # matches PyTorch slicing
    t_idx = jnp.arange(T)[None, None, :]
    mask = (t_idx < lens[:, None, None]).astype(jnp.float32)
    cnt = lens.astype(jnp.float32)[:, None, None]
    mean = jnp.sum(xf * mask, axis=2, keepdims=True) / cnt
    var = jnp.sum(((xf - mean) * mask) ** 2, axis=2, keepdims=True) / cnt
    out = (xf - mean) / jnp.sqrt(var + eps)
    out = out * weight.astype(jnp.float32)[None, :, None] + \
        bias.astype(jnp.float32)[None, :, None]
    return out.astype(x.dtype)


if __name__ == "__main__":
    B, C, T = 2, 8, 16          # num_groups == num_channels == C
    eps = 1e-5

    key = jax.random.PRNGKey(0)
    kx, kw, kb = jax.random.split(key, 3)

    x = jax.random.normal(kx, (B, C, T), dtype=jnp.float32)
    x_lens = jnp.array([16, 11], dtype=jnp.int32)
    weight = jax.random.normal(kw, (C,), dtype=jnp.float32)
    bias = jax.random.normal(kb, (C,), dtype=jnp.float32)

    out = jax.block_until_ready(
        fp32_masked_group_norm(x, x_lens, weight, bias, eps=eps))

    ref = _reference(x, x_lens, weight, bias, eps=eps)
    assert out.shape == (B, C, T) and out.dtype == x.dtype
    assert jnp.allclose(out, ref, atol=1e-5, rtol=1e-5), "mismatch vs reference"

    print("KERNEL_OK")
</pallas_src>

<mosaic_0001>
module attributes {stable_mosaic.version = 11 : i64} {
  func.func @_masked_gn_kernel(%arg0: i32, %arg1: i32, %arg2: memref<2xi32, #tpu.memory_space<smem>>, %arg3: memref<1x8x128xf32, #tpu.memory_space<vmem>>, %arg4: memref<8x1xf32, #tpu.memory_space<vmem>>, %arg5: memref<8x1xf32, #tpu.memory_space<vmem>>, %arg6: memref<1x8x128xf32, #tpu.memory_space<vmem>>, %arg7: memref<8x1xf32, #tpu.memory_space<vmem>>, %arg8: memref<8x1xf32, #tpu.memory_space<vmem>>) attributes {dimension_semantics = [#tpu.dimension_semantics<parallel>, #tpu.dimension_semantics<parallel>], iteration_bounds = array<i64: 1, 2>, scalar_prefetch = 1 : i64, scratch_operands = 2 : i64, tpu.core_type = #tpu.core_type<tc>, window_params = [{transform_indices = @transform_0, window_bounds = array<i64: 1, 8, 128>}, {transform_indices = @transform_1, window_bounds = array<i64: 8, 1>}, {transform_indices = @transform_2, window_bounds = array<i64: 8, 1>}, {transform_indices = @transform_3, window_bounds = array<i64: 1, 8, 128>}]} {
    %0 = arith.index_cast %arg1 : i32 to index
    %1 = memref.load %arg2[%0] : memref<2xi32, #tpu.memory_space<smem>>
    %c16_i32 = arith.constant 16 : i32
    %2 = arith.minsi %1, %c16_i32 : i32
    %3 = arith.sitofp %2 : i32 to f32
    %cst = arith.constant 1.000000e+00 : f32
    %4 = arith.divf %cst, %3 : f32
    %c16_i32_0 = arith.constant 16 : i32
    %5 = arith.cmpi sge, %2, %c16_i32_0 : i32
    %6 = arith.extui %5 : i1 to i32
    %c0_i32 = arith.constant 0 : i32
    %7 = arith.cmpi ne, %6, %c0_i32 : i32
    scf.if %7 {
      %c0_18 = arith.constant 0 : index
      %c0_19 = arith.constant 0 : index
      %c0_20 = arith.constant 0 : index
      %38 = vector.load %arg3[%c0_18, %c0_19, %c0_20] : memref<1x8x128xf32, #tpu.memory_space<vmem>>, vector<1x8x128xf32>
      %39 = vector.shape_cast %38 : vector<1x8x128xf32> to vector<8x128xf32>
      %cst_21 = arith.constant dense<0.000000e+00> : vector<8xf32>
      %40 = vector.multi_reduction <add>, %39, %cst_21 [1] : vector<8x128xf32> to vector<8xf32>
      %41 = vector.shape_cast %40 : vector<8xf32> to vector<8x1xf32>
      %c0_22 = arith.constant 0 : index
      %c0_23 = arith.constant 0 : index
      %42 = vector.load %arg7[%c0_22, %c0_23] : memref<8x1xf32, #tpu.memory_space<vmem>>, vector<8x1xf32>
      tpu.vector_store %arg7[%c0_22, %c0_23], %41 {strides = array<i32>} : memref<8x1xf32, #tpu.memory_space<vmem>>, vector<8x1xf32>,
      %43 = arith.mulf %39, %39 : vector<8x128xf32>
      %cst_24 = arith.constant dense<0.000000e+00> : vector<8xf32>
      %44 = vector.multi_reduction <add>, %43, %cst_24 [1] : vector<8x128xf32> to vector<8xf32>
      %45 = vector.shape_cast %44 : vector<8xf32> to vector<8x1xf32>
      %c0_25 = arith.constant 0 : index
      %c0_26 = arith.constant 0 : index
      %46 = vector.load %arg8[%c0_25, %c0_26] : memref<8x1xf32, #tpu.memory_space<vmem>>, vector<8x1xf32>
      tpu.vector_store %arg8[%c0_25, %c0_26], %45 {strides = array<i32>} : memref<8x1xf32, #tpu.memory_space<vmem>>, vector<8x1xf32>,
    } else {
    }
    %c16_i32_1 = arith.constant 16 : i32
    %8 = arith.cmpi slt, %2, %c16_i32_1 : i32
    %9 = arith.extui %8 : i1 to i32
    %c0_i32_2 = arith.constant 0 : i32
    %10 = arith.cmpi ne, %9, %c0_i32_2 : i32
    scf.if %10 {
      %c0_18 = arith.constant 0 : index
      %c0_19 = arith.constant 0 : index
      %c0_20 = arith.constant 0 : index
      %38 = vector.load %arg3[%c0_18, %c0_19, %c0_20] : memref<1x8x128xf32, #tpu.memory_space<vmem>>, vector<1x8x128xf32>
      %39 = vector.shape_cast %38 : vector<1x8x128xf32> to vector<8x128xf32>
      %40 = tpu.iota {dimensions = array<i32: 1>} : vector<8x128xi32>
      %41 = vector.broadcast %2 : i32 to vector<8x128xi32>
      %42 = arith.cmpi slt, %40, %41 : vector<8x128xi32>
      %cst_21 = arith.constant 0.000000e+00 : f32
      %43 = vector.broadcast %cst_21 : f32 to vector<8x128xf32>
      %44 = arith.select %42, %39, %43 : vector<8x128xi1>, vector<8x128xf32>
      %cst_22 = arith.constant dense<0.000000e+00> : vector<8xf32>
      %45 = vector.multi_reduction <add>, %44, %cst_22 [1] : vector<8x128xf32> to vector<8xf32>
      %46 = vector.shape_cast %45 : vector<8xf32> to vector<8x1xf32>
      %c0_23 = arith.constant 0 : index
      %c0_24 = arith.constant 0 : index
      %47 = vector.load %arg7[%c0_23, %c0_24] : memref<8x1xf32, #tpu.memory_space<vmem>>, vector<8x1xf32>
      tpu.vector_store %arg7[%c0_23, %c0_24], %46 {strides = array<i32>} : memref<8x1xf32, #tpu.memory_space<vmem>>, vector<8x1xf32>,
      %48 = arith.mulf %44, %44 : vector<8x128xf32>
      %cst_25 = arith.constant dense<0.000000e+00> : vector<8xf32>
      %49 = vector.multi_reduction <add>, %48, %cst_25 [1] : vector<8x128xf32> to vector<8xf32>
      %50 = vector.shape_cast %49 : vector<8xf32> to vector<8x1xf32>
      %c0_26 = arith.constant 0 : index
      %c0_27 = arith.constant 0 : index
      %51 = vector.load %arg8[%c0_26, %c0_27] : memref<8x1xf32, #tpu.memory_space<vmem>>, vector<8x1xf32>
      tpu.vector_store %arg8[%c0_26, %c0_27], %50 {strides = array<i32>} : memref<8x1xf32, #tpu.memory_space<vmem>>, vector<8x1xf32>,
    } else {
    }
    %c0 = arith.constant 0 : index
    %c0_3 = arith.constant 0 : index
    %11 = vector.load %arg7[%c0, %c0_3] : memref<8x1xf32, #tpu.memory_space<vmem>>, vector<8x1xf32>
    %12 = vector.broadcast %4 : f32 to vector<8x1xf32>
    %13 = arith.mulf %11, %12 : vector<8x1xf32>
    %c0_4 = arith.constant 0 : index
    %c0_5 = arith.constant 0 : index
    %14 = vector.load %arg8[%c0_4, %c0_5] : memref<8x1xf32, #tpu.memory_space<vmem>>, vector<8x1xf32>
    %15 = vector.broadcast %4 : f32 to vector<8x1xf32>
    %16 = arith.mulf %14, %15 : vector<8x1xf32>
    %17 = arith.mulf %13, %13 : vector<8x1xf32>
    %18 = arith.subf %16, %17 : vector<8x1xf32>
    %cst_6 = arith.constant 0.000000e+00 : f32
    %19 = vector.broadcast %cst_6 : f32 to vector<8x1xf32>
    %20 = arith.maximumf %18, %19 : vector<8x1xf32>
    %cst_7 = arith.constant 9.99999974E-6 : f32
    %21 = vector.broadcast %cst_7 : f32 to vector<8x1xf32>
    %22 = arith.addf %20, %21 : vector<8x1xf32>
    %23 = math.rsqrt %22 : vector<8x1xf32>
    %c0_8 = arith.constant 0 : index
    %c0_9 = arith.constant 0 : index
    %24 = vector.load %arg4[%c0_8, %c0_9] : memref<8x1xf32, #tpu.memory_space<vmem>>, vector<8x1xf32>
    %25 = arith.mulf %23, %24 : vector<8x1xf32>
    %c0_10 = arith.constant 0 : index
    %c0_11 = arith.constant 0 : index
    %26 = vector.load %arg5[%c0_10, %c0_11] : memref<8x1xf32, #tpu.memory_space<vmem>>, vector<8x1xf32>
    %27 = arith.mulf %13, %25 : vector<8x1xf32>
    %28 = arith.subf %26, %27 : vector<8x1xf32>
    %c0_12 = arith.constant 0 : index
    %c0_13 = arith.constant 0 : index
    %c0_14 = arith.constant 0 : index
    %29 = vector.load %arg3[%c0_12, %c0_13, %c0_14] : memref<1x8x128xf32, #tpu.memory_space<vmem>>, vector<1x8x128xf32>
    %30 = vector.shape_cast %29 : vector<1x8x128xf32> to vector<8x128xf32>
    %31 = vector.broadcast %25 : vector<8x1xf32> to vector<8x128xf32>
    %32 = arith.mulf %30, %31 : vector<8x128xf32>
    %33 = vector.broadcast %28 : vector<8x1xf32> to vector<8x128xf32>
    %34 = arith.addf %32, %33 : vector<8x128xf32>
    %c0_15 = arith.constant 0 : index
    %c0_16 = arith.constant 0 : index
    %c0_17 = arith.constant 0 : index
    %35 = vector.load %arg6[%c0_15, %c0_16, %c0_17] : memref<1x8x128xf32, #tpu.memory_space<vmem>>, vector<1x8x128xf32>
    %36 = vector.shape_cast %35 : vector<1x8x128xf32> to vector<8x128xf32>
    %37 = vector.shape_cast %34 : vector<8x128xf32> to vector<1x8x128xf32>
    tpu.vector_store %arg6[%c0_15, %c0_16, %c0_17], %37 {strides = array<i32>} : memref<1x8x128xf32, #tpu.memory_space<vmem>>, vector<1x8x128xf32>,
    return
  }
  func.func @transform_0(%arg0: i32, %arg1: i32, %arg2: memref<2xi32, #tpu.memory_space<smem>>) -> (i32, i32, i32) {
    %c0_i32 = arith.constant 0 : i32
    %c0_i32_0 = arith.constant 0 : i32
    return %arg1, %arg0, %c0_i32 : i32, i32, i32
  }
  func.func @transform_1(%arg0: i32, %arg1: i32, %arg2: memref<2xi32, #tpu.memory_space<smem>>) -> (i32, i32) {
    %c0_i32 = arith.constant 0 : i32
    %c0_i32_0 = arith.constant 0 : i32
    return %arg0, %c0_i32 : i32, i32
  }
  func.func @transform_2(%arg0: i32, %arg1: i32, %arg2: memref<2xi32, #tpu.memory_space<smem>>) -> (i32, i32) {
    %c0_i32 = arith.constant 0 : i32
    %c0_i32_0 = arith.constant 0 : i32
    return %arg0, %c0_i32 : i32, i32
  }
  func.func @transform_3(%arg0: i32, %arg1: i32, %arg2: memref<2xi32, #tpu.memory_space<smem>>) -> (i32, i32, i32) {
    %c0_i32 = arith.constant 0 : i32
    %c0_i32_0 = arith.constant 0 : i32
    return %arg1, %arg0, %c0_i32 : i32, i32, i32
  }
}

</mosaic_0001>

<bundles_post_ra>
// kernel: tpu_custom_call.1
= control target key start
LH: loop header
LB: loop body
LE: loop exit
PB: predicated region body
PF: predicated region fallthrough
CT: control target
= control target key end

     0   :  { %s766_s0 = inlined_call_operand.vmem [shape: s32[2], index: 0, kind: input, shape index: {}]   ;;  %s767_s1 = inlined_call_operand.vmem [shape: f32[2,8,128], index: 1, kind: input, shape index: {}]   ;;  %s768_s2 = inlined_call_operand.vmem [shape: f32[8,1], index: 2, kind: input, shape index: {}]   ;;  %s769_s3 = inlined_call_operand.vmem [shape: f32[8,1], index: 3, kind: input, shape index: {}]   ;;  %s770_s4 = inlined_call_operand.hbm [shape: f32[2,8,128], index: 4, kind: output, shape index: {}]  }
   0x1   :  { %s9_s17 = sshll.u32 %s766_s0, 4  ;;  %s10_s17 = int_to_ptr.vmem [resolvable:$true] %s9_s17 }
   0x2   :  { %s501_s18 = scalar_lea.vmem %s10_s17, 16  ;;  %p506_p1 = scmp.lt.s32.totalorder %s10_s17, %s10_s17 }
   0x3   :  { %p502_p0 = scmp.ne.s32.totalorder %s10_s17, %s501_s18  ;;  %p507_p2 = scmp.lt.s32.totalorder %s501_s18, %s501_s18 }
   0x5   :  { %p508_p3 = por %p507_p2, %p506_p1 }
   0x7   :  { %p509_p4 = pnand %p508_p3, %p502_p0 }
   0x9   :  { %512 = shalt.err (!%p509_p4)  }
   0xa   :  { %s595_s19 = smov [#allocation5]  }
   0xb   :  { %12 = dma.vmem_to_smem %s10_s17, 16, %s595_s19, [#allocation4] }
   0xc   :  { %565 = dma.done.wait [#allocation4], 16 }
   0xd   :  { %566 = vsyncadd [#allocation4], 4294967280 }
   0xe   :  { %14 = sfence }
   0xf   :  { %15 = vsyncpa [#allocation7], 0 }
  0x10   :  { %17 = vsyncpa [#allocation7 + $0x1], 0  ;;  %s626_s20 = smov 0   ;;  %s628_s21 = smov 0  }
  0x11   :  { %s630_s0 = smov 0   ;;  %s632_s22 = smov 0  }
  0x12   :  { %s634_s23 = smov 0   ;;  %s636_s24 = smov 0  }
  0x13 LB: > { %s415_s25 = sadd.s32 4294967295, %s593_s24   ;;  %s416_s26 = sadd.s32 4294967294, %s593_s24   ;;  %s593_s24 = sphi %s636_s24, %s23_s24   ;;  %s589_s23 = sphi %s634_s23, %s777_s23   ;;  %s585_s22 = sphi %s632_s22, %s776_s22   ;;  %s581_s0 = sphi %s630_s0, %s775_s0   ;;  %s577_s21 = sphi %s628_s21, %s774_s21   ;;  %s573_s20 = sphi %s626_s20, %s773_s20  }
  0x14   : > { %s32_s27 = sadd.s32 1, %s589_s23  ;;  %s124_s28 = sadd.s32 1, %s581_s0 }
  0x15   : > { %p33_p5 = scmp.ge.s32.totalorder %s32_s27, 2  ;;  %p134_p6 = scmp.ne.s32.totalorder %s581_s0, %s577_s21 }
  0x16   : > { %p135_p7 = scmp.eq.s32.totalorder %s415_s25, 1  ;;  %p140_p8 = scmp.ne.s32.totalorder %s577_s21, %s573_s20 }
  0x17   : > { %s779_s27 = smov (%p33_p5, %s32_s27), 0  ;;  %p141_p10 = scmp.eq.s32.totalorder %s416_s26, 1 }
  0x18   : > { %p666_p9 = por %p135_p7, %p134_p6  ;;  %s119_s30 = ssub.s32 %s589_s23, %s779_s27 }
  0x19   : > { %p421_p11 = scmp.ge.s32.totalorder %s593_s24, 1  ;;  %p122_p12 = scmp.eq.s32.totalorder %s119_s30, 0 }
  0x1a   : > { %p673_p13 = por %p141_p10, %p140_p8  ;;  %p183_p0 = scmp.lt.s32.totalorder %s593_s24, 3 }
  0x1b   : > { %s679_s6 = scalar_select %p122_p12, %s581_s0, %s124_s28  }
  0x1c   : > { %p184_p1 = pnand %p421_p11, %p183_p0 }
  0x1d   : > { %s214_s7 = sand.u32 (!%p184_p1), 1, %s577_s21   ;;  %p217_p2 = scmp.lt.s32.totalorder (!%p184_p1), %s585_s22, 1 }
  0x1e   : > { %187 = sbr.rel (%p184_p1) target bundleno = 519 (0x207), region = 32  ;;  %s685_s8 = sshll.u32 (!%p184_p1), %s214_s7, 3 }
  0x1f   : > { %s232_s9 = sld [smem:[#allocation5 + %s585_s22]] (!%p184_p1)  ;;  %s216_s18 = scalar_lea.vmem (!%p184_p1), [#allocation6], %s685_s8 }
  0x25   : > { %s218_s10 = scalar_select %p217_p2, %s585_s22, 1 }
  0x26   : > { %p233_p3 = scmp.lt.s32.totalorder %s232_s9, 16  ;;  %p424_p4 = scmp.ge.s32.totalorder %s232_s9, 16 }
  0x27   : > { %s423_s11 = sshll.u32 %s218_s10, 3  ;;  %vm246_vm0 = vcmask (%p424_p4), 7168  }
  0x28   : > { %s692_s14 = scalar_lea.vmem %s767_s1, %s423_s11 }
  0x29   : > { %s234_s15 = scalar_select %p233_p3, %s232_s9, 16 }
  0x2a   : > { %v243_v2 = vld [vmem:[%s692_s14] sm:$0xff] (%p424_p4) }
  0x2b   : > { %s235_s16 = scvt.s32.f32 %s234_s15  ;;  %244 = vadd.xlane.f32.xlu0 (%p424_p4), %v243_v2  ;;  %v248_v3 = vmul.f32 (%p424_p4), %v243_v2, %v243_v2 }
  0x2d   : > { %v236_v0 = vstv %s235_s16 }
  0x2e   : > { %496 = vrcp.f32 %v236_v0 }
  0x2f   : > { %249 = vadd.xlane.f32.xlu0 (%p424_p4), %v248_v3 }
  0x38   : > { %v497_v1 = vpop.eup %496 }
  0x39   : > { %437 = vpush %v497_v1 }
  0x64   : > { %242 = sbr.rel (!%p424_p4) target bundleno = 190 (0xbe), region = 36 }
  0x6a   : > { %s695_s17 = spop %437 }
  0xb8   : > { %v245_v4 = vpop.xlane.xlu0 %244 }
  0xb9   : > { %247 = vst.msk [vmem:[#allocation2] sm:$0xff] %vm246_vm0, %v245_v4 }
  0xbc   : > { %v250_v5 = vpop.xlane.xlu0 %249 }
  0xbd   : > { %251 = vst.msk [vmem:[#allocation3] sm:$0xff] %vm246_vm0, %v250_v5 }
  0xbe PF: > { %255 = sbr.rel (!%p233_p3) target bundleno = 343 (0x157), region = 40  ;;  %v257_v6 = vlaneseq (%p233_p3)  ;;  %v259_v7 = vstv (%p233_p3), %s234_s15  ;;  %v256_v8 = vld [vmem:[%s692_s14] sm:$0xff] (%p233_p3)  ;;  %vm264_vm2 = vcmask (%p233_p3), 7168  }
  0xc0   : > { %v258_v9 = vand.u32 (%p233_p3), 127, %v257_v6 }
  0xc2   : > { %vm260_vm1 = vcmp.lt.s32.totalorder (%p233_p3), %v258_v9, %v259_v7 }
  0xc3   : > { %v261_v10 = vsel (%p233_p3), %vm260_vm1, %v256_v8, 0.0 }
  0xc4   : > { %262 = vadd.xlane.f32.xlu0 (%p233_p3), %v261_v10  ;;  %v266_v11 = vmul.f32 (%p233_p3), %v261_v10, %v261_v10 }
  0xc8   : > { %267 = vadd.xlane.f32.xlu0 %v266_v11 }
 0x151   : > { %v263_v12 = vpop.xlane.xlu0 %262 }
 0x152   : > { %265 = vst.msk [vmem:[#allocation2] sm:$0xff] %vm264_vm2, %v263_v12 }
 0x155   : > { %v268_v13 = vpop.xlane.xlu0 %267 }
 0x156   : > { %269 = vst.msk [vmem:[#allocation3] sm:$0xff] %vm264_vm2, %v268_v13 }
 0x157 PF: > { %v271_v15 = vstv %s695_s17  ;;  %v596_v17 = vmov 0   ;;  %v280_v24 = vld [vmem:[%s768_s2] sm:$0xff]  ;;  %s432_s30 = sshll.u32 %s585_s22, 7  ;;  %s314_s9 = sshll.u32 %s216_s18, 4  ;;  %s717_s9 = int_to_ptr.vmem [resolvable:$true] %s314_s9 }
 0x158   : > { %498 = vset.pattern.permute.xlu0 %v596_v17  ;;  %v282_v27 = vld [vmem:[%s769_s3] sm:$0xff]  ;;  %s715_s12 = scalar_lea.hbm %s770_s4, %s432_s30  ;;  %s300_s13 = scalar_lea.sflag [#allocation7], %s214_s7 }
 0x159   : > { %v270_v14 = vld [vmem:[#allocation2] sm:$0xff]  ;;  %s513_s22 = scalar_lea.vmem %s717_s9, 128 }
 0x15a   : > { %v272_v18 = vmul.f32 %v271_v15, %v270_v14  ;;  %v285_v30 = vld [vmem:[%s692_s14] sm:$0xff]  ;;  %p514_p5 = scmp.ne.s32.totalorder %s717_s9, %s513_s22  ;;  %s597_s14 = smov [#allocation6]  }
 0x15b   : > { %s517_s15 = sshll.u32 %s597_s14, 4  ;;  %s518_s15 = int_to_ptr.vmem [resolvable:$false] %s517_s15 }
 0x15c   : > { %v275_v20 = vmul.f32 %v272_v18, %v272_v18  ;;  %p515_p6 = pnand %p514_p5, %p666_p9  ;;  %s519_s16 = scalar_lea.vmem %s518_s15, 256 }
 0x15d   : > { %v273_v16 = vld [vmem:[#allocation3] sm:$0xff]  ;;  %p520_p8 = scmp.lt.s32.totalorder %s717_s9, %s518_s15  ;;  %p521_p10 = scmp.lt.s32.totalorder %s519_s16, %s513_s22 }
 0x15e   : > { %v274_v19 = vmul.f32 %v273_v16, %v271_v15  ;;  %p516_p7 = pneg %p515_p6 }
 0x15f   : > { %p522_p11 = por %p521_p10, %p520_p8 }
 0x160   : > { %v276_v21 = vsub.f32 %v274_v19, %v275_v20 }
 0x161   : > { %p523_p12 = pnand %p522_p11, %p516_p7 }
 0x162   : > { %v277_v22 = vmax.f32 %v276_v21, 0.0 }
 0x164   : > { %v278_v23 = vadd.f32 1e-05, %v277_v22 }
 0x166   : > { %499 = vrsqrt.f32 %v278_v23 }
 0x170   : > { %v500_v25 = vpop.eup %499 }
 0x171   : > { %v281_v26 = vmul.f32 %v500_v25, %v280_v24 }
 0x173   : > { %288 = vperm.xlu0 %498, %v281_v26   ;;  %v283_v28 = vmul.f32 %v281_v26, %v272_v18 }
 0x175   : > { %v284_v29 = vsub.f32 %v282_v27, %v283_v28 }
 0x177   : > { %294 = vperm.xlu0 %498, %v284_v29  }
 0x1f2   : > { %v289_v31 = vpop.permute.xlu0 %288 }
 0x1f3   : > { %v291_v32 = vmul.f32 %v289_v31, %v285_v30 }
 0x1f6   : > { %v295_v33 = vpop.permute.xlu0 %294 }
 0x1f7   : > { %v297_v34 = vadd.f32 %v295_v33, %v291_v32 }
 0x1f9   : > { %298 = vst [vmem:[%s216_s18] sm:$0xff] %v297_v34 }
 0x1fa   : > { %526 = shalt.err (!%p523_p12)
}
 0x1fb   : > { %s527_s7 = scalar_lea.hbm %s715_s12, 128  ;;  %s531_s18 = scalar_lea.hbm %s770_s4, 256 }
 0x1fc   : > { %p528_p0 = scmp.ne.s32.totalorder %s715_s12, %s527_s7  ;;  %p532_p3 = scmp.lt.u32.totalorder %s715_s12, %s770_s4 }
 0x1fd   : > { %p533_p4 = scmp.lt.u32.totalorder %s531_s18, %s527_s7  ;;  %p535_p6 = scmp.lt.u32.totalorder %s527_s7, %s715_s12 }
 0x1fe   : > { %p529_p1 = pnand %p528_p0, %p666_p9 }
 0x1ff   : > { %p534_p5 = por %p533_p4, %p532_p3 }
 0x200   : > { %p530_p2 = pneg %p529_p1 }
 0x201   : > { %p536_p7 = por %p535_p6, %p534_p5 }
 0x203   : > { %p537_p8 = pnand %p536_p7, %p530_p2 }
 0x205   : > { %540 = shalt.err (!%p537_p8)
}
 0x206   : > { %439 = dma.vmem_to_hbm [thread:$0]  (%p666_p9), %s717_s9, 128, %s715_s12, %s300_s13  }
 0x207 PF: > { %p445_p10 = scmp.ge.s32.totalorder %s593_s24, 2  ;;  %s326_s26 = sand.u32 1, %s573_s20  }
 0x208   : > { %s327_s28 = scalar_lea.sflag [#allocation7], %s326_s26 }
 0x209   : > { %p442_p11 = pnand %p445_p10, %p673_p13 }
 0x20b   : > { %568 = dma.done.wait (!%p442_p11), %s327_s28, 128  }
 0x20c   : > { %570 = vsyncadd (!%p442_p11), %s327_s28, 4294967168  ;;  %s23_s24 = sadd.s32 1, %s593_s24   ;;  %s773_s20 = smov %s577_s21 }
 0x20d   : > { %p20_p12 = scmp.ge.s32.totalorder %s23_s24, 4   ;;  %s774_s21 = smov %s581_s0 }
 0x20e   : > { %s775_s0 = smov %s679_s6  ;;  %s776_s22 = smov %s589_s23 }
 0x20f   : > { %s777_s23 = smov %s779_s27  ;;  %22 = sbr.rel (!%p20_p12) target bundleno = 19 (0x13), region = 81 }
 0x216   :  { %332 = vsyncpa [#allocation7], 1 }
 0x217   :  { %334 = vsyncpa [#allocation7 + $0x1], 1 }

</bundles_post_ra>
